<compile_context>
chip_gen: v5e
topology: v5e:2x2
jax: 0.10.0
libtpu: 0.0.40
codegen_flags: <defaults>
</compile_context>

<pallas_src>
import functools

import jax
import jax.numpy as jnp
from jax.experimental import pallas as pl
from jax.experimental.pallas import tpu as pltpu

_LANES = 128  # lane-dense column width; full-width blocks => contiguous DMA


def _round_down(x, m):
    return (x // m) * m


def _pick_hw_params():
    """(max_block_rows, vmem_limit_bytes) tuned per TPU generation."""
    try:
        vmem_bytes = int(pltpu.get_tpu_info().vmem_capacity_bytes)
    except Exception:  # conservative default if introspection is unavailable
        vmem_bytes = 128 * 1024 * 1024
    if vmem_bytes <= 64 * 1024 * 1024:
        # v7x-class (64 MiB VMEM/TC): 4 MiB per input per buffer ->
        # 16 MiB of double-buffered inputs, well inside a 40 MiB budget.
        return 8192, 40 * 1024 * 1024
    # v5e / v6e (128 MiB VMEM): 8 MiB per input per buffer -> 32 MiB buffered.
    return 16384, 64 * 1024 * 1024


def _distance_loss_kernel(pred_ref, true_ref, out_ref, acc_ref, *,
                          block_rows, steps, rows_total, needs_mask):
    """Streaming sum(|true - pred|) into an (8, 128) f32 VMEM accumulator."""
    p = pl.program_id(0)
    j = pl.program_id(1)

    @pl.when(j == 0)
    def _():
        acc_ref[...] = jnp.zeros_like(acc_ref)

    ad = jnp.abs(true_ref[...].astype(jnp.float32) -
                 pred_ref[...].astype(jnp.float32))

    def _accumulate(x):
        # Fold sublane-groups together: (block_rows, 128) -> (8, 128).
        # Pure VALU vreg adds; no cross-lane movement per step.
        acc_ref[...] += x.reshape(block_rows // 8, 8, _LANES).sum(axis=0)

    if needs_mask:
        # Valid rows in this block (can be <= 0 for clamped phantom blocks).
        rem = rows_total - (p * steps + j) * block_rows

        @pl.when(rem >= block_rows)
        def _():  # steady state: full block, no masking cost
            _accumulate(ad)

        @pl.when(rem < block_rows)
        def _():  # partial / phantom block: mask stale rows before the sum
            rows = jax.lax.broadcasted_iota(jnp.int32, (block_rows, 1), 0)
            _accumulate(jnp.where(rows < rem, ad, 0.0))
    else:
        _accumulate(ad)

    @pl.when(j == steps - 1)
    def _():
        # Single cross-lane/sublane reduce per grid slice, stored to SMEM.
        out_ref[0, 0] = jnp.sum(acc_ref[...])


def distance_loss(center_pred, center_true, reduction="mean", *,
                  max_block_rows=None):
    """L1 norm along dim 0 followed by mean/sum over the remaining dims."""
    if reduction not in ("mean", "sum"):
        raise ValueError(
            f"Unsupported reduction {reduction!r}; expected 'mean' or 'sum'.")
    if center_pred.shape != center_true.shape:
        raise ValueError("center_pred and center_true must have equal shapes")
    shape = center_pred.shape

    n_dist = 1
    for s in shape[1:]:
        n_dist *= int(s)
    denom = float(n_dist) if reduction == "mean" else 1.0

    total = 1
    for s in shape:
        total *= int(s)

    # Contiguous reshapes are free (no data movement).
    flat_p = center_pred.reshape(-1)
    flat_t = center_true.reshape(-1)

    # Fast path: tiny inputs, or element counts that cannot be viewed as
    # (rows, 128) without a copy.  XLA fuses abs-diff-reduce into a single
    # 2N-byte read pass, which avoids the padded-copy traffic entirely.
    if total % _LANES != 0 or total < 8 * _LANES:
        s = jnp.sum(jnp.abs(flat_t.astype(jnp.float32) -
                            flat_p.astype(jnp.float32)))
        return s / jnp.float32(denom)

    hw_rows, vmem_limit = _pick_hw_params()
    if max_block_rows is not None:
        hw_rows = max(8, _round_down(int(max_block_rows), 8))

    rows_total = total // _LANES                      # >= 8 on this path
    p2d = flat_p.reshape(rows_total, _LANES)          # free reshape, no pad
    t2d = flat_t.reshape(rows_total, _LANES)

    block_rows = hw_rows if rows_total >= hw_rows else _round_down(rows_total, 8)
    nb = pl.cdiv(rows_total, block_rows)              # number of row blocks
    num_partials = 2 if nb >= 4 else 1                # shard blocks across TCs
    steps = pl.cdiv(nb, num_partials)
    needs_mask = (rows_total % block_rows != 0) or (nb != num_partials * steps)

    if nb == num_partials * steps:
        def idx(p, j):
            return (p * steps + j, 0)
    else:
        def idx(p, j):
            # Clamp phantom blocks of the uneven split back in-bounds; the
            # kernel masks their contribution to exactly zero.
            return (jnp.minimum(p * steps + j, nb - 1), 0)

    in_spec = pl.BlockSpec((block_rows, _LANES), idx)

    kernel = functools.partial(
        _distance_loss_kernel,
        block_rows=block_rows, steps=steps,
        rows_total=rows_total, needs_mask=needs_mask)

    itemsize = jnp.dtype(center_pred.dtype).itemsize

    partials = pl.pallas_call(
        kernel,
        out_shape=jax.ShapeDtypeStruct((num_partials, 1), jnp.float32),
        grid_spec=pltpu.PrefetchScalarGridSpec(
            num_scalar_prefetch=0,
            grid=(num_partials, steps),
            in_specs=[in_spec, in_spec],
            out_specs=pl.BlockSpec((1, 1), lambda p, j: (p, 0),
                                   memory_space=pltpu.SMEM),
            scratch_shapes=[pltpu.VMEM((8, _LANES), jnp.float32)],
        ),
        compiler_params=pltpu.CompilerParams(
            dimension_semantics=("parallel", "arbitrary"),
            vmem_limit_bytes=vmem_limit,
        ),
        cost_estimate=pl.CostEstimate(
            flops=3 * total,
            transcendentals=0,
            bytes_accessed=2 * total * itemsize + 4 * num_partials),
    )(p2d, t2d)

    return jnp.sum(partials) / jnp.float32(denom)


def distance_loss_ref(center_pred, center_true, reduction="mean"):
    distances = jnp.sum(jnp.abs(center_true - center_pred), axis=0)
    return jnp.mean(distances) if reduction == "mean" else jnp.sum(distances)


if __name__ == "__main__":
    key = jax.random.PRNGKey(0)
    k1, k2, k3, k4, k5, k6 = jax.random.split(key, 6)

    # Center predictions: 4 coordinate components x 256 points
    # (1024 elements -> single (8, 128) block, zero-copy kernel path).
    center_pred = jax.random.normal(k1, (4, 256), dtype=jnp.float32)
    center_true = jax.random.normal(k2, (4, 256), dtype=jnp.float32)

    loss = distance_loss(center_pred, center_true, reduction="mean")
    jax.block_until_ready(loss)
    ref = distance_loss_ref(center_pred, center_true, reduction="mean")
    assert jnp.allclose(loss, ref, rtol=1e-5, atol=1e-5), (loss, ref)

    loss_s = distance_loss(center_pred, center_true, reduction="sum")
    jax.block_until_ready(loss_s)
    ref_s = distance_loss_ref(center_pred, center_true, reduction="sum")
    assert jnp.allclose(loss_s, ref_s, rtol=1e-5, atol=1e-4), (loss_s, ref_s)

    # Multi-block + partial-final-block + 2-partition path (small block
    # override forces the in-kernel row-masking and phantom-block clamping).
    pred2 = jax.random.normal(k3, (4, 2080), dtype=jnp.float32)
    true2 = jax.random.normal(k4, (4, 2080), dtype=jnp.float32)
    loss2 = distance_loss(pred2, true2, reduction="mean", max_block_rows=16)
    jax.block_until_ready(loss2)
    ref2 = distance_loss_ref(pred2, true2, reduction="mean")
    assert jnp.allclose(loss2, ref2, rtol=1e-5, atol=1e-5), (loss2, ref2)

    # Element count not a multiple of 128 -> fused jnp fast path (no pad copy).
    pred3 = jax.random.normal(k5, (3, 7, 5), dtype=jnp.float32)
    true3 = jax.random.normal(k6, (3, 7, 5), dtype=jnp.float32)
    loss3 = distance_loss(pred3, true3, reduction="mean")
    jax.block_until_ready(loss3)
    ref3 = distance_loss_ref(pred3, true3, reduction="mean")
    assert jnp.allclose(loss3, ref3, rtol=1e-5, atol=1e-5), (loss3, ref3)

    print("KERNEL_OK")
</pallas_src>

<mosaic_0001>
module attributes {stable_mosaic.version = 11 : i64} {
  func.func @_distance_loss_kernel(%arg0: i32, %arg1: i32, %arg2: memref<8x128xf32, #tpu.memory_space<vmem>>, %arg3: memref<8x128xf32, #tpu.memory_space<vmem>>, %arg4: memref<1x1xf32, #tpu.memory_space<smem>>, %arg5: memref<8x128xf32, #tpu.memory_space<vmem>>) attributes {dimension_semantics = [#tpu.dimension_semantics<parallel>, #tpu.dimension_semantics<arbitrary>], iteration_bounds = array<i64: 1, 1>, scalar_prefetch = 0 : i64, scratch_operands = 1 : i64, tpu.core_type = #tpu.core_type<tc>, window_params = [{transform_indices = @transform_0, window_bounds = array<i64: 8, 128>}, {transform_indices = @transform_1, window_bounds = array<i64: 8, 128>}, {transform_indices = @transform_2, window_bounds = array<i64: 1, 1>}]} {
    %c0_i32 = arith.constant 0 : i32
    %0 = arith.cmpi eq, %arg1, %c0_i32 : i32
    %1 = arith.extui %0 : i1 to i32
    %c0_i32_0 = arith.constant 0 : i32
    %2 = arith.cmpi ne, %1, %c0_i32_0 : i32
    scf.if %2 {
      %cst_10 = arith.constant 0.000000e+00 : f32
      %15 = vector.broadcast %cst_10 : f32 to vector<8x128xf32>
      %c0_11 = arith.constant 0 : index
      %c0_12 = arith.constant 0 : index
      %16 = vector.load %arg5[%c0_11, %c0_12] : memref<8x128xf32, #tpu.memory_space<vmem>>, vector<8x128xf32>
      tpu.vector_store %arg5[%c0_11, %c0_12], %15 {strides = array<i32>} : memref<8x128xf32, #tpu.memory_space<vmem>>, vector<8x128xf32>,
    } else {
    }
    %c0 = arith.constant 0 : index
    %c0_1 = arith.constant 0 : index
    %3 = vector.load %arg3[%c0, %c0_1] : memref<8x128xf32, #tpu.memory_space<vmem>>, vector<8x128xf32>
    %c0_2 = arith.constant 0 : index
    %c0_3 = arith.constant 0 : index
    %4 = vector.load %arg2[%c0_2, %c0_3] : memref<8x128xf32, #tpu.memory_space<vmem>>, vector<8x128xf32>
    %5 = arith.subf %3, %4 : vector<8x128xf32>
    %6 = math.absf %5 : vector<8x128xf32>
    %c0_4 = arith.constant 0 : index
    %c0_5 = arith.constant 0 : index
    %7 = vector.load %arg5[%c0_4, %c0_5] : memref<8x128xf32, #tpu.memory_space<vmem>>, vector<8x128xf32>
    %8 = vector.shape_cast %6 : vector<8x128xf32> to vector<1x8x128xf32>
    %cst = arith.constant dense<0.000000e+00> : vector<8x128xf32>
    %9 = vector.multi_reduction <add>, %8, %cst [0] : vector<1x8x128xf32> to vector<8x128xf32>
    %10 = arith.addf %7, %9 : vector<8x128xf32>
    %c0_6 = arith.constant 0 : index
    %c0_7 = arith.constant 0 : index
    %11 = vector.load %arg5[%c0_6, %c0_7] : memref<8x128xf32, #tpu.memory_space<vmem>>, vector<8x128xf32>
    tpu.vector_store %arg5[%c0_6, %c0_7], %10 {strides = array<i32>} : memref<8x128xf32, #tpu.memory_space<vmem>>, vector<8x128xf32>,
    %c0_i32_8 = arith.constant 0 : i32
    %12 = arith.cmpi eq, %arg1, %c0_i32_8 : i32
    %13 = arith.extui %12 : i1 to i32
    %c0_i32_9 = arith.constant 0 : i32
    %14 = arith.cmpi ne, %13, %c0_i32_9 : i32
    scf.if %14 {
      %c0_10 = arith.constant 0 : index
      %c0_11 = arith.constant 0 : index
      %15 = vector.load %arg5[%c0_10, %c0_11] : memref<8x128xf32, #tpu.memory_space<vmem>>, vector<8x128xf32>
      %16 = vector.shape_cast %15 : vector<8x128xf32> to vector<1x8x128xf32>
      %cst_12 = arith.constant dense<0.000000e+00> : vector<1xf32>
      %17 = vector.multi_reduction <add>, %16, %cst_12 [1, 2] : vector<1x8x128xf32> to vector<1xf32>
      %18 = vector.shape_cast %17 : vector<1xf32> to vector<1x1x1xf32>
      %19 = vector.extract %18[0, 0, 0] : f32 from vector<1x1x1xf32>
      %c0_13 = arith.constant 0 : index
      %c0_14 = arith.constant 0 : index
      %20 = memref.load %arg4[%c0_13, %c0_14] : memref<1x1xf32, #tpu.memory_space<smem>>
      memref.store %19, %arg4[%c0_13, %c0_14] : memref<1x1xf32, #tpu.memory_space<smem>>
    } else {
    }
    return
  }
  func.func @transform_0(%arg0: i32, %arg1: i32) -> (i32, i32) {
    %c1_i32 = arith.constant 1 : i32
    %0 = arith.muli %arg0, %c1_i32 : i32
    %1 = arith.addi %0, %arg1 : i32
    %c0_i32 = arith.constant 0 : i32
    %c0_i32_0 = arith.constant 0 : i32
    return %1, %c0_i32 : i32, i32
  }
  func.func @transform_1(%arg0: i32, %arg1: i32) -> (i32, i32) {
    %c1_i32 = arith.constant 1 : i32
    %0 = arith.muli %arg0, %c1_i32 : i32
    %1 = arith.addi %0, %arg1 : i32
    %c0_i32 = arith.constant 0 : i32
    %c0_i32_0 = arith.constant 0 : i32
    return %1, %c0_i32 : i32, i32
  }
  func.func @transform_2(%arg0: i32, %arg1: i32) -> (i32, i32) {
    %c0_i32 = arith.constant 0 : i32
    %c0_i32_0 = arith.constant 0 : i32
    return %arg0, %c0_i32 : i32, i32
  }
}

</mosaic_0001>

<bundles_post_ra>
// kernel: tpu_custom_call.1
= control target key start
LH: loop header
LB: loop body
LE: loop exit
PB: predicated region body
PF: predicated region fallthrough
CT: control target
= control target key end

     0   :  { %7 = vsyncpa [#allocation4], 0  ;;  %s191_s0 = inlined_call_operand.hbm [shape: f32[8,128], index: 0, kind: input, shape index: {}]   ;;  %s192_s1 = inlined_call_operand.hbm [shape: f32[8,128], index: 1, kind: input, shape index: {}]   ;;  %s193_s2 = inlined_call_operand.hbm [shape: f32[1,1], index: 2, kind: output, shape index: {}]  }
   0x1   :  { %8 = vsyncpa [#allocation7], 0 }
   0x2   :  { %9 = vsyncpa [#allocation5], 0  ;;  %s18_s11 = sshll.u32 %s191_s0, 4  ;;  %s164_s12 = smov [#allocation3]   ;;  %s19_s11 = int_to_ptr.hbm [resolvable:$true] %s18_s11 }
   0x3   :  { %s20_s13 = sshll.u32 %s164_s12, 4  ;;  %s32_s16 = sshll.u32 %s192_s1, 4  ;;  %s21_s13 = int_to_ptr.vmem [resolvable:$true] %s20_s13  ;;  %s33_s16 = int_to_ptr.hbm [resolvable:$true] %s32_s16 }
   0x4   :  { %23 = dma.hbm_to_vmem [thread:$0]  %s19_s11, 128, %s21_s13, [#allocation4]  }
   0x5   :  { %s165_s17 = smov [#allocation6]  }
   0x6   :  { %s34_s18 = sshll.u32 %s165_s17, 4  ;;  %s35_s18 = int_to_ptr.vmem [resolvable:$true] %s34_s18 }
   0x7   :  { %37 = dma.hbm_to_vmem [thread:$0]  %s33_s16, 128, %s35_s18, [#allocation7]  }
   0x8   :  { %158 = dma.done.wait [#allocation4], 128  }
   0x9   :  { %159 = vsyncadd [#allocation4], 4294967168 }
   0xa   :  { %160 = dma.done.wait [#allocation7], 128  }
   0xb   :  { %161 = vsyncadd [#allocation7], 4294967168  ;;  %v53_v0 = vld [vmem:[#allocation6] sm:$0xff]  ;;  %v54_v1 = vld [vmem:[#allocation3] sm:$0xff]  ;;  %s81_s19 = sshll.u32 %s193_s2, 4  ;;  %s166_s21 = smov [#allocation8]   ;;  %s82_s19 = int_to_ptr.hbm [resolvable:$true] %s81_s19 }
   0xc   :  { %v55_v2 = vsub.f32 %v53_v0, %v54_v1 }
   0xe   :  { %v56_v3 = vand.u32 2147483647, %v55_v2 }
  0x10   :  { %65 = vadd.xlane.f32.xlu0 %v56_v3 }
  0x83   :  { %v66_v4 = vpop.xlane.xlu0 %65 }
  0x84   :  { %v67_v5 = vrot.slane %v66_v4, 4 }
  0x86   :  { %v68_v6 = vadd.f32 %v67_v5, %v66_v4 }
  0x88   :  { %v69_v7 = vrot.slane %v68_v6, 2 }
  0x8a   :  { %v70_v8 = vadd.f32 %v69_v7, %v68_v6 }
  0x8c   :  { %v71_v9 = vrot.slane %v70_v8, 1 }
  0x8e   :  { %v72_v10 = vadd.f32 %v71_v9, %v70_v8 }
  0x90   :  { %93 = vpush %v72_v10 }
  0xc1   :  { %s94_s20 = spop %93 }
  0xc2   :  { %75 = sst [smem:[#allocation8]] %s94_s20 }
  0xc3   :  { %84 = dma.smem_to_hbm %s166_s21, 16, %s82_s19, [#allocation5]  }
  0xc4   :  { %162 = dma.done.wait [#allocation5], 16  }
  0xc5   :  { %163 = vsyncadd [#allocation5], 4294967280 }
  0xc6   :  { %89 = sfence }
  0xc7   :  { %90 = vsyncpa [#allocation4], 1 }
  0xc8   :  { %91 = vsyncpa [#allocation7], 1 }
  0xc9   :  { %92 = vsyncpa [#allocation5], 1 }

</bundles_post_ra>
